<compile_context>
chip_gen: v6e
topology: v6e:2x2x1
jax: 0.10.0
libtpu: 0.0.40
codegen_flags: <defaults>
</compile_context>

<pallas_src>
import numpy as np
import jax
import jax.numpy as jnp
from jax.experimental import pallas as pl
from jax.experimental.pallas import tpu as pltpu


# ----------------------------------------------------------------------------
# Kernel 1: PCA texture decode  (coeffs @ basisT + mean), bf16 stream, f32 acc
# ----------------------------------------------------------------------------
def _decode_kernel(coeffs_ref, basis_ref, mean_ref, out_ref):
    # coeffs_ref: (Bp, N) bf16   basis_ref: (N, TD) bf16
    # mean_ref:   (1, TD) f32    out_ref:   (Bp, TD) f32
    acc = jnp.dot(coeffs_ref[...], basis_ref[...],
                  preferred_element_type=jnp.float32)
    out_ref[...] = acc + mean_ref[...]


def _choose_decode_tile(D, N, B_pad, target=8192, vmem_budget=12 * 1024 * 1024):
    """Largest multiple-of-128 divisor of D that is <= target and whose
    double-buffered working set stays well under the scoped-VMEM default on
    every chip (v5e 16 MiB / v6e 32 MiB / v7x 32 MiB of 64 MiB physical)."""
    if D % 128 != 0:
        return D
    t = min(target, D)
    t -= t % 128
    t = max(t, 128)
    while t > 128 and D % t != 0:
        t -= 128

    def working_set(td):
        # 2 buffers of: bf16 basis tile + f32 output tile + f32 mean tile,
        # plus the resident bf16 coeffs block.
        return 2 * (N * td * 2 + B_pad * td * 4 + td * 4) + B_pad * N * 2

    while t > 128 and working_set(t) > vmem_budget:
        nt = t - 128
        while nt > 128 and D % nt != 0:
            nt -= 128
        t = nt
    return t


def pca_decode(coeffs, basis_t, mean, *, tile_d=None):
    """coeffs (B, N) f32, basis_t (N, D) bf16, mean (1, D) f32 -> (B, D) f32."""
    B, N = coeffs.shape
    _, D = basis_t.shape

    # Pad the batch to a multiple of 8 so output stores are sublane-dense;
    # padded rows decode to `mean` and are sliced off (kernel is memory-bound,
    # so the extra FLOPs are free).
    B_pad = ((B + 7) // 8) * 8
    coeffs_p = jnp.zeros((B_pad, N), jnp.float32).at[:B].set(coeffs)
    coeffs_bf = coeffs_p.astype(jnp.bfloat16)

    if tile_d is None:
        tile_d = _choose_decode_tile(D, N, B_pad)
    assert D % tile_d == 0

    out = pl.pallas_call(
        _decode_kernel,
        out_shape=jax.ShapeDtypeStruct((B_pad, D), jnp.float32),
        grid_spec=pltpu.PrefetchScalarGridSpec(
            num_scalar_prefetch=0,
            grid=(D // tile_d,),
            in_specs=[
                pl.BlockSpec((B_pad, N), lambda d: (0, 0)),
                pl.BlockSpec((N, tile_d), lambda d: (0, d)),
                pl.BlockSpec((1, tile_d), lambda d: (0, d)),
            ],
            out_specs=pl.BlockSpec((B_pad, tile_d), lambda d: (0, d)),
        ),
        compiler_params=pltpu.CompilerParams(
            dimension_semantics=("parallel",),
            vmem_limit_bytes=32 * 1024 * 1024),
    )(coeffs_bf, basis_t, mean)
    return out[:B]


# ----------------------------------------------------------------------------
# Kernel 2: separable bilinear resize  (Wr @ img @ Wc^T), Pt planes per step
# ----------------------------------------------------------------------------
def _make_resize_kernel(planes_per_step):
    def _resize_kernel(img_ref, wr_ref, wct_ref, out_ref):
        # img_ref: (Pt, R, R)  wr_ref: (OUT, R)  wct_ref: (R, OUT)
        # out_ref: (Pt, OUT, OUT)
        wr = wr_ref[...]
        wct = wct_ref[...]
        for p in range(planes_per_step):         # static unroll; pure 2D MXU dots
            t = jnp.dot(wr, img_ref[p],
                        preferred_element_type=jnp.float32)      # (OUT, R)
            out_ref[p] = jnp.dot(t, wct,
                                 preferred_element_type=jnp.float32)  # (OUT, OUT)
    return _resize_kernel


def bilinear_resize(planes, wr, wc_t):
    # planes: (P, R, R) f32 -> (P, OUT, OUT) f32
    P, R, _ = planes.shape
    OUT = wr.shape[0]
    pt = 1
    for cand in (6, 3, 2, 1):                    # amortize per-step overhead
        if P % cand == 0:
            pt = cand
            break
    return pl.pallas_call(
        _make_resize_kernel(pt),
        out_shape=jax.ShapeDtypeStruct((P, OUT, OUT), jnp.float32),
        grid_spec=pltpu.PrefetchScalarGridSpec(
            num_scalar_prefetch=0,
            grid=(P // pt,),
            in_specs=[
                pl.BlockSpec((pt, R, R), lambda p: (p, 0, 0)),
                pl.BlockSpec((OUT, R), lambda p: (0, 0)),
                pl.BlockSpec((R, OUT), lambda p: (0, 0)),
            ],
            out_specs=pl.BlockSpec((pt, OUT, OUT), lambda p: (p, 0, 0)),
        ),
        compiler_params=pltpu.CompilerParams(
            dimension_semantics=("parallel",)),
    )(planes, wr, wc_t)


# ----------------------------------------------------------------------------
# Glue: bilinear weight matrix (PyTorch F.interpolate, align_corners=False)
# ----------------------------------------------------------------------------
def bilinear_weight_matrix(in_size, out_size):
    w = np.zeros((out_size, in_size), dtype=np.float32)
    scale = in_size / out_size
    for i in range(out_size):
        src = (i + 0.5) * scale - 0.5
        src = min(max(src, 0.0), in_size - 1.0)
        i0 = int(np.floor(src))
        i1 = min(i0 + 1, in_size - 1)
        frac = src - i0
        w[i, i0] += 1.0 - frac
        w[i, i1] += frac
    return w


# ----------------------------------------------------------------------------
# TextureGenerationModel forward (synthetic FFHQ3DMM parameters)
# ----------------------------------------------------------------------------
class TextureGenerationModel:
    def __init__(self, n_coeff=16, model_resolution=16, out_resolution=8,
                 param_key=jax.random.PRNGKey(42)):
        # Production uses model_resolution=256, out_resolution=224; shrunk here.
        self.n_coeff = n_coeff
        self.R = model_resolution
        self.out_res = out_resolution
        D = 3 * self.R * self.R
        k_basis, k_mean = jax.random.split(param_key)
        # PCA texture basis (N, D), stored in bf16 (the decode is HBM-bound on
        # this read); mean kept in f32 (tiny).
        self.basis_t = (jax.random.normal(k_basis, (n_coeff, D),
                                          dtype=jnp.float32) * 0.1
                        ).astype(jnp.bfloat16)
        self.mean = jax.random.uniform(k_mean, (1, D), dtype=jnp.float32)
        wr = bilinear_weight_matrix(self.R, self.out_res)
        wc = bilinear_weight_matrix(self.R, self.out_res)
        self.wr = jnp.asarray(wr)               # (OUT, R)
        self.wc_t = jnp.asarray(wc.T)           # (R, OUT)  pre-transposed on host

    def __call__(self, coeffs):
        B = coeffs.shape[0]
        # 1) PCA decode on the MXU (bf16 stream, f32 accumulate)
        flat = pca_decode(coeffs, self.basis_t, self.mean)          # (B, 3*R*R)
        # 2) reshape to NCHW
        tex = flat.reshape(B, 3, self.R, self.R)                    # (B, 3, R, R)
        # 3) bilinear resize to out_resolution, several planes per grid step
        planes = tex.reshape(B * 3, self.R, self.R)
        out = bilinear_resize(planes, self.wr, self.wc_t)           # (B*3, O, O)
        return out.reshape(B, 3, self.out_res, self.out_res)


if __name__ == "__main__":
    B, N_COEFF, R, OUT = 2, 16, 16, 8
    model = TextureGenerationModel(n_coeff=N_COEFF, model_resolution=R,
                                   out_resolution=OUT)
    coeffs = jax.random.normal(jax.random.PRNGKey(0), (B, N_COEFF),
                               dtype=jnp.float32)
    textures = model(coeffs)
    jax.block_until_ready(textures)

    assert textures.shape == (B, 3, OUT, OUT)
    assert textures.dtype == jnp.float32

    # Pure-JAX reference (same bf16-quantized params the kernels consume).
    basis_f32 = model.basis_t.astype(jnp.float32)
    coeffs_q = coeffs.astype(jnp.bfloat16).astype(jnp.float32)
    flat_ref = coeffs_q @ basis_f32 + model.mean
    tex_ref = flat_ref.reshape(B, 3, R, R)
    ref = jnp.einsum('or,bcrk,kq->bcoq', model.wr, tex_ref, model.wc_t)
    np.testing.assert_allclose(np.asarray(textures), np.asarray(ref),
                               atol=3e-2, rtol=0)
    assert bool(jnp.all(jnp.isfinite(textures)))
    print("KERNEL_OK")
</pallas_src>

<mosaic_0001>
module attributes {stable_mosaic.version = 11 : i64} {
  func.func @_decode_kernel(%arg0: i32, %arg1: memref<8x16xbf16, #tpu.memory_space<vmem>>, %arg2: memref<16x768xbf16, #tpu.memory_space<vmem>>, %arg3: memref<1x768xf32, #tpu.memory_space<vmem>>, %arg4: memref<8x768xf32, #tpu.memory_space<vmem>>) attributes {dimension_semantics = [#tpu.dimension_semantics<parallel>], iteration_bounds = array<i64: 1>, scalar_prefetch = 0 : i64, scratch_operands = 0 : i64, tpu.core_type = #tpu.core_type<tc>, window_params = [{pipeline_mode = #tpu.pipeline_mode<synchronous>, transform_indices = @transform_0, window_bounds = array<i64: 8, 16>}, {transform_indices = @transform_1, window_bounds = array<i64: 16, 768>}, {transform_indices = @transform_2, window_bounds = array<i64: 1, 768>}, {transform_indices = @transform_3, window_bounds = array<i64: 8, 768>}]} {
    %c0 = arith.constant 0 : index
    %c0_0 = arith.constant 0 : index
    %0 = vector.load %arg1[%c0, %c0_0] : memref<8x16xbf16, #tpu.memory_space<vmem>>, vector<8x16xbf16>
    %c0_1 = arith.constant 0 : index
    %c0_2 = arith.constant 0 : index
    %1 = vector.load %arg2[%c0_1, %c0_2] : memref<16x768xbf16, #tpu.memory_space<vmem>>, vector<16x768xbf16>
    %cst = arith.constant dense<0.000000e+00> : vector<8x768xf32>
    %2 = tpu.matmul %0, %1, %cst {dimension_numbers = #tpu.dot_dimension_numbers<[1], [0], [0], [1], [0, 0, 1, 1], [], []>} : vector<8x16xbf16>, vector<16x768xbf16>, vector<8x768xf32> -> vector<8x768xf32>
    %c0_3 = arith.constant 0 : index
    %c0_4 = arith.constant 0 : index
    %3 = vector.load %arg3[%c0_3, %c0_4] : memref<1x768xf32, #tpu.memory_space<vmem>>, vector<1x768xf32>
    %4 = vector.broadcast %3 : vector<1x768xf32> to vector<8x768xf32>
    %5 = arith.addf %2, %4 : vector<8x768xf32>
    %c0_5 = arith.constant 0 : index
    %c0_6 = arith.constant 0 : index
    %6 = vector.load %arg4[%c0_5, %c0_6] : memref<8x768xf32, #tpu.memory_space<vmem>>, vector<8x768xf32>
    tpu.vector_store %arg4[%c0_5, %c0_6], %5 {strides = array<i32>} : memref<8x768xf32, #tpu.memory_space<vmem>>, vector<8x768xf32>,
    return
  }
  func.func @transform_0(%arg0: i32) -> (i32, i32) {
    %c0_i32 = arith.constant 0 : i32
    %c0_i32_0 = arith.constant 0 : i32
    %c0_i32_1 = arith.constant 0 : i32
    return %c0_i32, %c0_i32_0 : i32, i32
  }
  func.func @transform_1(%arg0: i32) -> (i32, i32) {
    %c0_i32 = arith.constant 0 : i32
    %c0_i32_0 = arith.constant 0 : i32
    return %c0_i32, %arg0 : i32, i32
  }
  func.func @transform_2(%arg0: i32) -> (i32, i32) {
    %c0_i32 = arith.constant 0 : i32
    %c0_i32_0 = arith.constant 0 : i32
    return %c0_i32, %arg0 : i32, i32
  }
  func.func @transform_3(%arg0: i32) -> (i32, i32) {
    %c0_i32 = arith.constant 0 : i32
    %c0_i32_0 = arith.constant 0 : i32
    return %c0_i32, %arg0 : i32, i32
  }
}

</mosaic_0001>

<bundles_post_ra>
// kernel: tpu_custom_call.1
= control target key start
LH: loop header
LB: loop body
LE: loop exit
PB: predicated region body
PF: predicated region fallthrough
CT: control target
= control target key end

     0   :  { %8 = vsyncpa [#allocation3], 0  ;;  %s421_s0 = inlined_call_operand.hbm [shape: bf16[8,16], index: 0, kind: input, shape index: {}]   ;;  %s422_s1 = inlined_call_operand.hbm [shape: bf16[16,768], index: 1, kind: input, shape index: {}]   ;;  %s423_s2 = inlined_call_operand.hbm [shape: f32[1,768], index: 2, kind: input, shape index: {}]   ;;  %s424_s3 = inlined_call_operand.hbm [shape: f32[8,768], index: 3, kind: output, shape index: {}]  }
   0x1   :  { %9 = vsyncpa [#allocation6], 0 }
   0x2   :  { %10 = vsyncpa [#allocation4], 0  ;;  %s382_s12 = smov [#allocation5]  }
   0x3   :  { %s26_s13 = sshll.u32 %s382_s12, 4  ;;  %s27_s13 = int_to_ptr.vmem [resolvable:$true] %s26_s13 }
   0x4   :  { %s304_s14 = scalar_lea.vmem %s27_s13, 768  ;;  %p309_p1 = scmp.lt.s32.totalorder %s27_s13, %s27_s13 }
   0x5   :  { %p305_p0 = scmp.ne.s32.totalorder %s27_s13, %s304_s14  ;;  %p310_p2 = scmp.lt.s32.totalorder %s304_s14, %s304_s14 }
   0x7   :  { %p311_p3 = por %p310_p2, %p309_p1 }
   0x9   :  { %p312_p4 = pnand %p311_p3, %p305_p0 }
   0xb   :  { %315 = shalt.err (!%p312_p4)
}
   0xc   :  { %s383_s15 = smov 384   ;;  %s384_s16 = smov 24  }
   0xd   :  { %32 = dma.hbm_to_vmem [thread:$0]  %s422_s1, 768, %s27_s13, [#allocation6], %s383_s15, %s383_s15, %s384_s16  }
   0xe   :  { %s385_s19 = smov [#allocation2]   ;;  %s386_s21 = smov [#allocation7]  }
   0xf   :  { %s17_s20 = sshll.u32 %s385_s19, 4  ;;  %s39_s22 = sshll.u32 %s386_s21, 4  ;;  %s18_s20 = int_to_ptr.vmem [resolvable:$true] %s17_s20  ;;  %s40_s22 = int_to_ptr.vmem [resolvable:$true] %s39_s22 }
  0x10   :  { %s324_s23 = scalar_lea.vmem %s18_s20, 64  ;;  %p329_p6 = scmp.lt.s32.totalorder %s18_s20, %s18_s20 }
  0x11   :  { %p325_p5 = scmp.ne.s32.totalorder %s18_s20, %s324_s23  ;;  %p330_p7 = scmp.lt.s32.totalorder %s324_s23, %s324_s23 }
  0x13   :  { %p331_p8 = por %p330_p7, %p329_p6 }
  0x15   :  { %p332_p9 = pnand %p331_p8, %p325_p5 }
  0x17   :  { %335 = shalt.err (!%p332_p9)
}
  0x18   :  { %20 = dma.hbm_to_vmem [thread:$0]  %s421_s0, 64, %s18_s20, [#allocation3]  }
  0x19   :  { %s344_s26 = scalar_lea.vmem %s40_s22, 96  ;;  %p349_p11 = scmp.lt.s32.totalorder %s40_s22, %s40_s22 }
  0x1a   :  { %p345_p10 = scmp.ne.s32.totalorder %s40_s22, %s344_s26  ;;  %p350_p12 = scmp.lt.s32.totalorder %s344_s26, %s344_s26 }
  0x1c   :  { %p351_p13 = por %p350_p12, %p349_p11 }
  0x1e   :  { %p352_p0 = pnand %p351_p13, %p345_p10 }
  0x20   :  { %355 = shalt.err (!%p352_p0)
}
  0x21   :  { %42 = dma.hbm_to_vmem [thread:$0]  %s423_s2, 96, %s40_s22, [#allocation6]  }
  0x22   :  { %376 = dma.done.wait [#allocation3], 64  }
  0x23   :  { %377 = vsyncadd [#allocation3], 4294967232 }
  0x24   :  { %378 = dma.done.wait [#allocation6], 864  }
  0x25   :  { %379 = vsyncadd [#allocation6], 4294966432  ;;  %v387_v0 = vmov 0   ;;  %v287_v1 = vld [vmem:[#allocation5 + $0x4] ss:$24 sps:$4 sm:$0xff]   ;;  %vm122_vm0 = vcmask 130048   ;;  %v62_v8 = vlaneseq }
  0x26   :  { %158 = vmatprep.mubr.bf16.mxu0 %v387_v0  ;;  %199 = vmatprep.mubr.bf16.mxu1 %v387_v0  ;;  %v289_v2 = vld [vmem:[#allocation5] ss:$24 sps:$4 sm:$0xff]   ;;  %v290_v3 = vld [vmem:[#allocation5 + $0xc] ss:$24 sps:$4 sm:$0xff]   ;;  %v53_v4 = vld [vmem:[#allocation2] sm:$0xf] }
  0x27   :  { %140 = vmatprep.subr.bf16.mxu0 %v287_v1  ;;  %v292_v5 = vld [vmem:[#allocation5 + $0x8] ss:$24 sps:$4 sm:$0xff]   ;;  %181 = vmatprep.subr.bf16.mxu1 %v290_v3  ;;  %v295_v7 = vld [vmem:[#allocation5 + $0x14] ss:$24 sps:$4 sm:$0xff]   ;;  %v63_v9 = vshrl.u32 %v62_v8, 7  ;;  %s388_s0 = smov [#allocation8]  }
  0x28   :  { %141 = vmatpush1.bf16.msra.mxu0 %v289_v2  ;;  %v293_v6 = vld [vmem:[#allocation5 + $0x10] ss:$24 sps:$4 sm:$0xff]   ;;  %182 = vmatpush1.bf16.msra.mxu1 %v292_v5  ;;  %s261_s2 = sshll.u32 %s388_s0, 4  ;;  %s262_s2 = int_to_ptr.vmem [resolvable:$true] %s261_s2 }
  0x29   :  { %222 = vmatprep.subr.bf16.mxu0 %v295_v7  ;;  %v64_v10 = vsub.s32 0, %v63_v9  ;;  %v60_v11 = vld [vmem:[#allocation7] sm:$0x3f]  ;;  %v68_v12 = vsub.s32 1, %v63_v9  ;;  %v72_v13 = vsub.s32 2, %v63_v9  ;;  %v76_v15 = vsub.s32 3, %v63_v9  ;;  %p361_p2 = scmp.lt.s32.totalorder %s262_s2, %s262_s2 }
  0x2a   :  { %v80_v21 = vsub.s32 4, %v63_v9  ;;  %v84_v26 = vsub.s32 5, %v63_v9  ;;  %s356_s28 = scalar_lea.vmem %s262_s2, 768 }
  0x2b   :  { %277 = vmatmul.mubr.msk.bf16.vlgmr.msra.gmra.mxu0 %vm122_vm0, %v53_v4  ;;  %278 = vmatmul.mubr.msk.bf16.vlgmr.msra.gmra.mxu1 %vm122_vm0, %v53_v4  ;;  %v65_v14 = vrot.slane %v60_v11, %v64_v10  ;;  %v69_v16 = vrot.slane %v60_v11, %v68_v12  ;;  %v73_v17 = vrot.slane %v60_v11, %v72_v13  ;;  %p357_p1 = scmp.ne.s32.totalorder %s262_s2, %s356_s28  ;;  %p362_p3 = scmp.lt.s32.totalorder %s356_s28, %s356_s28 }
  0x2c   :  { %223 = vmatpush1.bf16.msra.mxu0 %v293_v6  ;;  %240 = vmatprep.mubr.bf16.mxu0 %v387_v0  ;;  %v77_v20 = vrot.slane %v60_v11, %v76_v15  ;;  %v81_v30 = vrot.slane %v60_v11, %v80_v21  ;;  %v85_v33 = vrot.slane %v60_v11, %v84_v26 }
  0x2d   :  { %p363_p4 = por %p362_p3, %p361_p2 }
  0x2f   :  { %p364_p5 = pnand %p363_p4, %p357_p1 }
  0x33   :  { %279 = vmatmul.mubr.msk.bf16.vlgmr.msra.gmra.mxu0 %vm122_vm0, %v53_v4 }
  0xeb   :  { %v160_v18 = vpop.f32.mrf.mxu0  ;;  %v201_v23 = vpop.f32.mrf.mxu1 }
  0xec   :  { %v161_v19 = vadd.f32 %v160_v18, %v65_v14  ;;  %v202_v25 = vadd.f32 %v201_v23, %v73_v17 }
  0xed   :  { %v162_v22 = vpop.f32.mrf.mxu0  ;;  %v203_v28 = vpop.f32.mrf.mxu1 }
  0xee   :  { %249 = vst [vmem:[#allocation8] sm:$0xff] %v161_v19  ;;  %v163_v24 = vadd.f32 %v162_v22, %v69_v16  ;;  %251 = vst [vmem:[#allocation8 + $0x10] sm:$0xff] %v202_v25  ;;  %v204_v29 = vadd.f32 %v203_v28, %v77_v20 }
  0xef   :  { %v164_v27 = vpop.f32.mrf.mxu0  ;;  %v205_v32 = vpop.f32.mrf.mxu1 }
  0xf0   :  { %250 = vst [vmem:[#allocation8 + $0x8] sm:$0xff] %v163_v24  ;;  %252 = vst [vmem:[#allocation8 + $0x18] sm:$0xff] %v204_v29 }
  0xf1   :  { %v165_v31 = vpop.f32.mrf.mxu0  ;;  %v206_v35 = vpop.f32.mrf.mxu1 }
  0xf3   :  { %v242_v34 = vpop.f32.mrf.mxu0 }
  0xf4   :  { %v243_v36 = vadd.f32 %v242_v34, %v81_v30 }
  0xf5   :  { %v244_v37 = vpop.f32.mrf.mxu0 }
  0xf6   :  { %253 = vst [vmem:[#allocation8 + $0x20] sm:$0xff] %v243_v36  ;;  %v245_v38 = vadd.f32 %v244_v37, %v85_v33 }
  0xf7   :  { %v246_v39 = vpop.f32.mrf.mxu0 }
  0xf8   :  { %254 = vst [vmem:[#allocation8 + $0x28] sm:$0xff] %v245_v38 }
  0xf9   :  { %v247_v40 = vpop.f32.mrf.mxu0 }
  0xfa   :  { %367 = shalt.err (!%p364_p5)
}
  0xfb   :  { %264 = dma.vmem_to_hbm [thread:$0]  %s262_s2, 768, %s424_s3, [#allocation4]  }
  0xfc   :  { %380 = dma.done.wait [#allocation4], 768  }
  0xfd   :  { %381 = vsyncadd [#allocation4], 4294966528 }
  0xfe   :  { %268 = vsyncpa [#allocation3], 1 }
  0xff   :  { %269 = vsyncpa [#allocation6], 1 }
 0x100   :  { %270 = vsyncpa [#allocation4], 1 }

</bundles_post_ra>
